<compile_context>
chip_gen: v6e
topology: v6e:2x2x1
jax: 0.10.0
libtpu: 0.0.40
codegen_flags: <defaults>
</compile_context>

<pallas_src>
import functools

import jax
import jax.numpy as jnp
from jax.experimental import pallas as pl
from jax.experimental.pallas import tpu as pltpu


def _generator_kernel(x_ref, w1_ref, b1_ref, w2_ref, b2_ref, o_ref):
    """out = tanh(relu(x @ W1 + b1) @ W2 + b2), one batch tile per grid step."""
    x = x_ref[...]                                   # (tm, latent) bf16
    # Layer 1: MXU matmul (bf16 in, f32 acc) + bias + ReLU in f32.
    h = jnp.dot(x, w1_ref[...], preferred_element_type=jnp.float32)
    h = jnp.maximum(h + b1_ref[...], 0.0)
    # Layer 2: feed hidden straight into the second MXU pass (no HBM trip).
    h = h.astype(jnp.bfloat16)
    y = jnp.dot(h, w2_ref[...], preferred_element_type=jnp.float32)
    y = jnp.tanh(y + b2_ref[...])
    o_ref[...] = y.astype(o_ref.dtype)


@functools.partial(jax.jit, static_argnames=("tm",))
def generator_forward(noise, params, *, tm=128):
    """Generator.forward(noise) == self.model(noise), fused single kernel."""
    B, K = noise.shape
    H = params["w1"].shape[1]
    N = params["w2"].shape[1]

    # Pad batch to a multiple of the batch tile (tm) so the grid is exact.
    tm = min(tm, max(8, ((B + 7) // 8) * 8))
    Bp = ((B + tm - 1) // tm) * tm
    x = noise.astype(jnp.bfloat16)
    if Bp != B:
        x = jnp.pad(x, ((0, Bp - B), (0, 0)))

    grid = (Bp // tm,)
    out = pl.pallas_call(
        _generator_kernel,
        out_shape=jax.ShapeDtypeStruct((Bp, N), jnp.float32),
        grid=grid,
        in_specs=[
            # Activations stream per batch tile.
            pl.BlockSpec((tm, K), lambda i: (i, 0)),
            # Weights / biases: constant block index -> DMA'd once, stay resident.
            pl.BlockSpec((K, H), lambda i: (0, 0)),
            pl.BlockSpec((1, H), lambda i: (0, 0)),
            pl.BlockSpec((H, N), lambda i: (0, 0)),
            pl.BlockSpec((1, N), lambda i: (0, 0)),
        ],
        out_specs=pl.BlockSpec((tm, N), lambda i: (i, 0)),
        compiler_params=pltpu.CompilerParams(
            dimension_semantics=("parallel",),   # shards batch tiles on v7x's 2 TCs
            vmem_limit_bytes=32 * 1024 * 1024,   # fits v7x's smaller VMEM comfortably
        ),
    )(x, params["w1"], params["b1"], params["w2"], params["b2"])

    if Bp != B:
        out = out[:B]
    return out


def init_generator_params(key, latent_dim, hidden_dim, out_dim):
    """Deterministic init, mirroring nn.Linear shapes (stored (in, out))."""
    k1, k2, k3, k4 = jax.random.split(key, 4)
    w1 = jax.random.normal(k1, (latent_dim, hidden_dim), jnp.float32) * (
        1.0 / jnp.sqrt(latent_dim)
    )
    b1 = jax.random.normal(k2, (1, hidden_dim), jnp.float32) * 0.01
    w2 = jax.random.normal(k3, (hidden_dim, out_dim), jnp.float32) * (
        1.0 / jnp.sqrt(hidden_dim)
    )
    b2 = jax.random.normal(k4, (1, out_dim), jnp.float32) * 0.01
    # Weights as bf16 (native MXU dtype on v6e/v7x); biases stay f32.
    return {
        "w1": w1.astype(jnp.bfloat16),
        "b1": b1,
        "w2": w2.astype(jnp.bfloat16),
        "b2": b2,
    }


def _reference_forward(noise, params):
    """Pure-JAX f32 reference using the same bf16-rounded weights/inputs."""
    x = noise.astype(jnp.bfloat16).astype(jnp.float32)
    w1 = params["w1"].astype(jnp.float32)
    w2 = params["w2"].astype(jnp.float32)
    h = jnp.maximum(x @ w1 + params["b1"], 0.0)
    return jnp.tanh(h @ w2 + params["b2"])


if __name__ == "__main__":
    key = jax.random.PRNGKey(0)
    k_noise, k_params = jax.random.split(key)

    batch, latent_dim, hidden_dim, out_dim = 256, 32, 128, 256
    noise = jax.random.normal(k_noise, (batch, latent_dim), jnp.float32)
    params = init_generator_params(k_params, latent_dim, hidden_dim, out_dim)

    out = generator_forward(noise, params)
    out = jax.block_until_ready(out)

    ref = _reference_forward(noise, params)
    assert out.shape == (batch, out_dim)
    # bf16 matmul inputs (f32 accumulate) -> loosened tolerance per review.
    assert jnp.allclose(out, ref, atol=2e-2, rtol=2e-2)

    print("KERNEL_OK")
</pallas_src>

<mosaic_0001>
module attributes {stable_mosaic.version = 11 : i64} {
  func.func @_generator_kernel(%arg0: i32, %arg1: memref<128x32xbf16, #tpu.memory_space<vmem>>, %arg2: memref<32x128xbf16, #tpu.memory_space<vmem>>, %arg3: memref<1x128xf32, #tpu.memory_space<vmem>>, %arg4: memref<128x256xbf16, #tpu.memory_space<vmem>>, %arg5: memref<1x256xf32, #tpu.memory_space<vmem>>, %arg6: memref<128x256xf32, #tpu.memory_space<vmem>>) attributes {dimension_semantics = [#tpu.dimension_semantics<parallel>], iteration_bounds = array<i64: 2>, scalar_prefetch = 0 : i64, scratch_operands = 0 : i64, tpu.core_type = #tpu.core_type<tc>, window_params = [{transform_indices = @transform_0, window_bounds = array<i64: 128, 32>}, {pipeline_mode = #tpu.pipeline_mode<synchronous>, transform_indices = @transform_1, window_bounds = array<i64: 32, 128>}, {pipeline_mode = #tpu.pipeline_mode<synchronous>, transform_indices = @transform_2, window_bounds = array<i64: 1, 128>}, {pipeline_mode = #tpu.pipeline_mode<synchronous>, transform_indices = @transform_3, window_bounds = array<i64: 128, 256>}, {pipeline_mode = #tpu.pipeline_mode<synchronous>, transform_indices = @transform_4, window_bounds = array<i64: 1, 256>}, {transform_indices = @transform_5, window_bounds = array<i64: 128, 256>}]} {
    %c0 = arith.constant 0 : index
    %c0_0 = arith.constant 0 : index
    %0 = vector.load %arg1[%c0, %c0_0] : memref<128x32xbf16, #tpu.memory_space<vmem>>, vector<128x32xbf16>
    %c0_1 = arith.constant 0 : index
    %c0_2 = arith.constant 0 : index
    %1 = vector.load %arg2[%c0_1, %c0_2] : memref<32x128xbf16, #tpu.memory_space<vmem>>, vector<32x128xbf16>
    %cst = arith.constant dense<0.000000e+00> : vector<128x128xf32>
    %2 = tpu.matmul %0, %1, %cst {dimension_numbers = #tpu.dot_dimension_numbers<[1], [0], [0], [1], [0, 0, 1, 1], [], []>} : vector<128x32xbf16>, vector<32x128xbf16>, vector<128x128xf32> -> vector<128x128xf32>
    %c0_3 = arith.constant 0 : index
    %c0_4 = arith.constant 0 : index
    %3 = vector.load %arg3[%c0_3, %c0_4] : memref<1x128xf32, #tpu.memory_space<vmem>>, vector<1x128xf32>
    %4 = vector.broadcast %3 : vector<1x128xf32> to vector<128x128xf32>
    %5 = arith.addf %2, %4 : vector<128x128xf32>
    %cst_5 = arith.constant 0.000000e+00 : f32
    %6 = vector.broadcast %cst_5 : f32 to vector<128x128xf32>
    %7 = arith.maximumf %5, %6 : vector<128x128xf32>
    %8 = arith.truncf %7 : vector<128x128xf32> to vector<128x128xbf16>
    %c0_6 = arith.constant 0 : index
    %c0_7 = arith.constant 0 : index
    %9 = vector.load %arg4[%c0_6, %c0_7] : memref<128x256xbf16, #tpu.memory_space<vmem>>, vector<128x256xbf16>
    %cst_8 = arith.constant dense<0.000000e+00> : vector<128x256xf32>
    %10 = tpu.matmul %8, %9, %cst_8 {dimension_numbers = #tpu.dot_dimension_numbers<[1], [0], [0], [1], [0, 0, 1, 1], [], []>} : vector<128x128xbf16>, vector<128x256xbf16>, vector<128x256xf32> -> vector<128x256xf32>
    %c0_9 = arith.constant 0 : index
    %c0_10 = arith.constant 0 : index
    %11 = vector.load %arg5[%c0_9, %c0_10] : memref<1x256xf32, #tpu.memory_space<vmem>>, vector<1x256xf32>
    %12 = vector.broadcast %11 : vector<1x256xf32> to vector<128x256xf32>
    %13 = arith.addf %10, %12 : vector<128x256xf32>
    %14 = math.tanh %13 : vector<128x256xf32>
    %c0_11 = arith.constant 0 : index
    %c0_12 = arith.constant 0 : index
    %15 = vector.load %arg6[%c0_11, %c0_12] : memref<128x256xf32, #tpu.memory_space<vmem>>, vector<128x256xf32>
    tpu.vector_store %arg6[%c0_11, %c0_12], %14 {strides = array<i32>} : memref<128x256xf32, #tpu.memory_space<vmem>>, vector<128x256xf32>,
    return
  }
  func.func @transform_0(%arg0: i32) -> (i32, i32) {
    %c0_i32 = arith.constant 0 : i32
    %c0_i32_0 = arith.constant 0 : i32
    return %arg0, %c0_i32 : i32, i32
  }
  func.func @transform_1(%arg0: i32) -> (i32, i32) {
    %c0_i32 = arith.constant 0 : i32
    %c0_i32_0 = arith.constant 0 : i32
    %c0_i32_1 = arith.constant 0 : i32
    return %c0_i32, %c0_i32_0 : i32, i32
  }
  func.func @transform_2(%arg0: i32) -> (i32, i32) {
    %c0_i32 = arith.constant 0 : i32
    %c0_i32_0 = arith.constant 0 : i32
    %c0_i32_1 = arith.constant 0 : i32
    return %c0_i32, %c0_i32_0 : i32, i32
  }
  func.func @transform_3(%arg0: i32) -> (i32, i32) {
    %c0_i32 = arith.constant 0 : i32
    %c0_i32_0 = arith.constant 0 : i32
    %c0_i32_1 = arith.constant 0 : i32
    return %c0_i32, %c0_i32_0 : i32, i32
  }
  func.func @transform_4(%arg0: i32) -> (i32, i32) {
    %c0_i32 = arith.constant 0 : i32
    %c0_i32_0 = arith.constant 0 : i32
    %c0_i32_1 = arith.constant 0 : i32
    return %c0_i32, %c0_i32_0 : i32, i32
  }
  func.func @transform_5(%arg0: i32) -> (i32, i32) {
    %c0_i32 = arith.constant 0 : i32
    %c0_i32_0 = arith.constant 0 : i32
    return %arg0, %c0_i32 : i32, i32
  }
}

</mosaic_0001>

<bundles_post_ra>
// kernel: generator_forward.1
= control target key start
LH: loop header
LB: loop body
LE: loop exit
PB: predicated region body
PF: predicated region fallthrough
CT: control target
= control target key end

     0   :  { %10 = vsyncpa [#allocation3], 0  ;;  %s1408_s0 = inlined_call_operand.vmem [shape: bf16[256,32], index: 0, kind: input, shape index: {}]   ;;  %s1409_s1 = inlined_call_operand.vmem [shape: bf16[32,128], index: 1, kind: input, shape index: {}]   ;;  %s1410_s2 = inlined_call_operand.vmem [shape: f32[1,128], index: 2, kind: input, shape index: {}]   ;;  %s1411_s3 = inlined_call_operand.vmem [shape: bf16[128,256], index: 3, kind: input, shape index: {}]   ;;  %s1412_s4 = inlined_call_operand.vmem [shape: f32[1,256], index: 4, kind: input, shape index: {}]   ;;  %s1413_s5 = inlined_call_operand.hbm [shape: f32[256,256], index: 5, kind: output, shape index: {}]  }
   0x1   :  { %12 = vsyncpa [#allocation3 + $0x1], 0  ;;  %s1146_s18 = smov 0   ;;  %s1148_s19 = smov 0  }
   0x2   :  { %s1150_s20 = smov 0   ;;  %s1152_s21 = smov 0  }
   0x3 LB: > { %s1167_s22 = sadd.s32 4294967295, %s1110_s21   ;;  %s814_s23 = sadd.s32 4294967294, %s1110_s21   ;;  %s1110_s21 = sphi %s1152_s21, %s1419_s21   ;;  %s1106_s20 = sphi %s1150_s20, %s1418_s20   ;;  %s1102_s19 = sphi %s1148_s19, %s1417_s19   ;;  %s1098_s18 = sphi %s1146_s18, %s1416_s18  }
   0x4   : > { %s1171_s24 = sadd.s32 1, %s1110_s21   ;;  %s135_s25 = sadd.s32 1, %s1106_s20 }
   0x5   : > { %s132_s26 = ssub.s32 %s1110_s21, %s1171_s24  ;;  %p145_p0 = scmp.ne.s32.totalorder %s1106_s20, %s1102_s19 }
   0x6   : > { %p133_p1 = scmp.eq.s32.totalorder %s132_s26, 0  ;;  %p146_p2 = scmp.eq.s32.totalorder %s1167_s22, 1 }
   0x7   : > { %p151_p3 = scmp.ne.s32.totalorder %s1102_s19, %s1098_s18  ;;  %p152_p4 = scmp.eq.s32.totalorder %s814_s23, 1 }
   0x8   : > { %s1182_s27 = scalar_select %p133_p1, %s1106_s20, %s135_s25  }
   0x9   : > { %p1184_p5 = por %p146_p2, %p145_p0  ;;  %p1188_p6 = por %p152_p4, %p151_p3 }
   0xa   : > { %p817_p7 = scmp.ge.s32.totalorder %s1110_s21, 1  ;;  %p191_p8 = scmp.lt.s32.totalorder %s1110_s21, 3 }
   0xc   : > { %p192_p9 = pnand %p817_p7, %p191_p8 }
   0xd   : > { %s819_s7 = sshll.u32 (!%p192_p9), %s1167_s22, 4  ;;  %s216_s23 = sand.u32 (!%p192_p9), 1, %s1102_s19  }
   0xe   : > { %195 = sbr.rel (%p192_p9) target bundleno = 503 (0x1f7), region = 40  ;;  %p220_p10 = scmp.lt.s32.totalorder (!%p192_p9), %s819_s7, 31 }
   0xf   : > { %s818_s26 = sshll.u32 (!%p192_p9), %s216_s23, 8  ;;  %s863_s6 = sshll.u32 (!%p192_p9), %s1167_s22, 12 }
  0x10   : > { %s1303_s30 = scalar_lea.vmem (!%p192_p9), [#allocation2], %s818_s26  ;;  %s1368_s10 = scalar_lea.sflag (!%p192_p9), [#allocation3], %s216_s23 }
  0x11   : > { %s1113_s11 = smov (!%p192_p9), [#allocation2]  }
  0x12   : > { %s1054_s12 = sshll.u32 (!%p192_p9), %s1113_s11, 4  ;;  %s1055_s12 = int_to_ptr.vmem [resolvable:$false] %s1054_s12 }
  0x13   : > { %v952_v0 = vld [vmem:[%s1409_s1 + $0x8] sm:$0xff]   ;;  %v953_v1 = vld [vmem:[%s1409_s1] sm:$0xff]   ;;  %s1421_s7 = smov (!%p220_p10, %s819_s7), 31  ;;  %v964_v2 = vld [vmem:[%s1411_s3 + $0x74] ss:$8 sps:$4 sm:$0xff]   ;;  %vm306_vm0 = vcmask 261120  }
  0x14   : > { %874 = vmatprep.subr.bf16.mxu0 %v952_v0  ;;  %v962_v3 = vld [vmem:[%s1411_s3 + $0x70] ss:$8 sps:$4 sm:$0xff]   ;;  %s820_s14 = sshll.u32 %s1421_s7, 2  ;;  %v967_v4 = vld [vmem:[%s1411_s3 + $0x64] ss:$8 sps:$4 sm:$0xff]   ;;  %894 = vmatprep.subr.bf16.mxu1 %v964_v2  ;;  %v1112_v26 = vmov 0  }
  0x15   : > { %875 = vmatpush3.bf16.msra.mxu0 %v952_v0  ;;  %s1213_s25 = scalar_lea.vmem %s1408_s0, %s820_s14  ;;  %v965_v5 = vld [vmem:[%s1411_s3 + $0x60] ss:$8 sps:$4 sm:$0xff]   ;;  %902 = vmatpush1.bf16.msra.mxu1 %v962_v3  ;;  %v970_v9 = vld [vmem:[%s1411_s3 + $0x54] ss:$8 sps:$4 sm:$0xff]   ;;  %v968_v10 = vld [vmem:[%s1411_s3 + $0x50] ss:$8 sps:$4 sm:$0xff]  }
  0x16   : > { %876 = vmatprep.subr.bf16.mxu0 %v953_v1  ;;  %v954_v6 = vld [vmem:[%s1213_s25] sm:$0xff]   ;;  %895 = vmatprep.subr.bf16.mxu1 %v967_v4  ;;  %v955_v7 = vld [vmem:[%s1213_s25 + $0x8] sm:$0xff]   ;;  %v956_v8 = vld [vmem:[%s1213_s25 + $0x10] sm:$0xff]   ;;  %s752_s7 = sshll.u32 %s1303_s30, 4  ;;  %s1056_s13 = scalar_lea.vmem %s1055_s12, 8192  ;;  %s1362_s7 = int_to_ptr.vmem [resolvable:$true] %s752_s7 }
  0x17   : > { %878 = vmatprep.mubr.msk.bf16.mxu0 %vm306_vm0, %v954_v6  ;;  %v957_v11 = vld [vmem:[%s1213_s25 + $0x18] sm:$0xff]   ;;  %v958_v12 = vld [vmem:[%s1213_s25 + $0x20] sm:$0xff]   ;;  %v959_v17 = vld [vmem:[%s1213_s25 + $0x28] sm:$0xff]   ;;  %622 = vmatprep.mubr.bf16.mxu1 %v1112_v26  ;;  %s1050_s22 = scalar_lea.vmem %s1362_s7, 4096  ;;  %p1057_p0 = scmp.lt.s32.totalorder %s1362_s7, %s1055_s12 }
  0x18   : > { %v973_v13 = vld [vmem:[%s1411_s3 + $0x44] ss:$8 sps:$4 sm:$0xff]   ;;  %v971_v14 = vld [vmem:[%s1411_s3 + $0x40] ss:$8 sps:$4 sm:$0xff]   ;;  %v976_v15 = vld [vmem:[%s1411_s3 + $0x34] ss:$8 sps:$4 sm:$0xff]   ;;  %p1051_p11 = scmp.ne.s32.totalorder %s1362_s7, %s1050_s22  ;;  %p1058_p1 = scmp.lt.s32.totalorder %s1056_s13, %s1050_s22 }
  0x19   : > { %877 = vmatpush3.bf16.msra.mxu0 %v953_v1  ;;  %903 = vmatpush1.bf16.msra.mxu1 %v965_v5  ;;  %v974_v16 = vld [vmem:[%s1411_s3 + $0x30] ss:$8 sps:$4 sm:$0xff]   ;;  %v979_v20 = vld [vmem:[%s1411_s3 + $0x24] ss:$8 sps:$4 sm:$0xff]   ;;  %v977_v21 = vld [vmem:[%s1411_s3 + $0x20] ss:$8 sps:$4 sm:$0xff]  }
  0x1a   : > { %560 = vmatprep.subr.bf16.mxu0 %v964_v2  ;;  %896 = vmatprep.subr.bf16.mxu1 %v970_v9  ;;  %v960_v18 = vld [vmem:[%s1213_s25 + $0x30] sm:$0xff]   ;;  %v961_v19 = vld [vmem:[%s1213_s25 + $0x38] sm:$0xff]   ;;  %v985_v24 = vld [vmem:[%s1411_s3 + $0x4] ss:$8 sps:$4 sm:$0xff]   ;;  %s1360_s25 = scalar_lea.hbm %s1413_s5, %s863_s6  ;;  %p1052_p12 = pnand %p1051_p11, %p1184_p5 }
  0x1b   : > { %v982_v22 = vld [vmem:[%s1411_s3 + $0x14] ss:$8 sps:$4 sm:$0xff]   ;;  %v980_v23 = vld [vmem:[%s1411_s3 + $0x10] ss:$8 sps:$4 sm:$0xff]   ;;  %v983_v25 = vld [vmem:[%s1411_s3] ss:$8 sps:$4 sm:$0xff]   ;;  %p1059_p2 = por %p1058_p1, %p1057_p0 }
  0x1c   : > { %879 = vmatmul.mubr.msk.bf16.vlgmr.msra.gmra.mxu0 %vm306_vm0, %v955_v7  ;;  %v821_v29 = vld [vmem:[%s1410_s2] ss:$0 sm:$0xff]  ;;  %p1053_p13 = pneg %p1052_p12 }
  0x1d   : > { %882 = vmatprep.mubr.msk.bf16.mxu0 %vm306_vm0, %v956_v8  ;;  %561 = vmatpush1.bf16.msra.mxu0 %v962_v3 }
  0x1e   : > { %562 = vmatprep.subr.bf16.mxu0 %v967_v4  ;;  %904 = vmatpush1.bf16.msra.mxu1 %v968_v10  ;;  %p1060_p3 = pnand %p1059_p2, %p1053_p13 }
  0x1f   : > { %897 = vmatprep.subr.bf16.mxu1 %v973_v13 }
  0x21   : > { %563 = vmatpush1.bf16.msra.mxu0 %v965_v5 }
  0x22   : > { %564 = vmatprep.subr.bf16.mxu0 %v970_v9  ;;  %905 = vmatpush1.bf16.msra.mxu1 %v971_v14 }
  0x23   : > { %898 = vmatprep.subr.bf16.mxu1 %v976_v15 }
  0x24   : > { %883 = vmatmul.mubr.msk.bf16.gmra.mxu0 %vm306_vm0, %v957_v11 }
  0x25   : > { %886 = vmatprep.mubr.msk.bf16.mxu0 %vm306_vm0, %v958_v12  ;;  %565 = vmatpush1.bf16.msra.mxu0 %v968_v10 }
  0x26   : > { %566 = vmatprep.subr.bf16.mxu0 %v973_v13  ;;  %906 = vmatpush1.bf16.msra.mxu1 %v974_v16 }
  0x27   : > { %899 = vmatprep.subr.bf16.mxu1 %v979_v20 }
  0x29   : > { %567 = vmatpush1.bf16.msra.mxu0 %v971_v14 }
  0x2a   : > { %568 = vmatprep.subr.bf16.mxu0 %v976_v15  ;;  %907 = vmatpush1.bf16.msra.mxu1 %v977_v21 }
  0x2b   : > { %900 = vmatprep.subr.bf16.mxu1 %v982_v22 }
  0x2c   : > { %887 = vmatmul.mubr.msk.bf16.gmra.mxu0 %vm306_vm0, %v959_v17 }
  0x2d   : > { %890 = vmatprep.mubr.msk.bf16.mxu0 %vm306_vm0, %v960_v18  ;;  %569 = vmatpush1.bf16.msra.mxu0 %v974_v16 }
  0x2e   : > { %570 = vmatprep.subr.bf16.mxu0 %v979_v20  ;;  %908 = vmatpush1.bf16.msra.mxu1 %v980_v23  ;;  %v470_v20 = vlaneseq }
  0x2f   : > { %901 = vmatprep.subr.bf16.mxu1 %v985_v24 }
  0x31   : > { %571 = vmatpush1.bf16.msra.mxu0 %v977_v21  ;;  %v471_v21 = vshrl.u32 %v470_v20, 7 }
  0x32   : > { %572 = vmatprep.subr.bf16.mxu0 %v982_v22  ;;  %909 = vmatpush1.bf16.msra.mxu1 %v983_v25 }
  0x33   : > { %v472_v22 = vsub.s32 0, %v471_v21 }
  0x34   : > { %891 = vmatmul.mubr.msk.bf16.gmra.mxu0 %vm306_vm0, %v961_v19 }
  0x35   : > { %573 = vmatpush1.bf16.msra.mxu0 %v980_v23  ;;  %592 = vmatprep.mubr.bf16.mxu0 %v1112_v26  ;;  %v468_v23 = vld [vmem:[%s1412_s4] sm:$0x3] }
  0x36   : > { %574 = vmatprep.subr.bf16.mxu0 %v985_v24  ;;  %v476_v24 = vsub.s32 1, %v471_v21 }
  0x39   : > { %575 = vmatpush1.bf16.msra.mxu0 %v983_v25  ;;  %v1284_v25 = vrot.slane %v468_v23, %v472_v22 }
  0xdc   : > { %v880_v27 = vpop.f32.mrf.mxu0 }
  0xdd   : > { %v374_v42 = vadd.f32 %v880_v27, %v821_v29  ;;  %v1286_v27 = vrot.slane %v468_v23, %v476_v24 }
  0xde   : > { %v365_v28 = vpop.f32.mrf.mxu0 }
  0xdf   : > { %v366_v31 = vadd.f32 %v821_v29, %v365_v28  ;;  %v430_v49 = vmax.f32 %v374_v42, 0.0 }
  0xe0   : > { %v881_v30 = vpop.f32.mrf.mxu0 }
  0xe1   : > { %v428_v35 = vmax.f32 %v366_v31, 0.0  ;;  %v377_v38 = vadd.f32 %v881_v30, %v821_v29 }
  0xe2   : > { %v368_v32 = vpop.f32.mrf.mxu0 }
  0xe3   : > { %v369_v33 = vadd.f32 %v821_v29, %v368_v32  ;;  %v431_v45 = vmax.f32 %v377_v38, 0.0 }
  0xe4   : > { %v884_v34 = vpop.f32.mrf.mxu0 }
  0xe5   : > { %v429_v36 = vmax.f32 %v369_v33, 0.0  ;;  %v390_v40 = vadd.f32 %v884_v34, %v821_v29  ;;  %v445_v52 = vpack.c.bf16 %v431_v45, %v430_v49 }
  0xe6   : > { %v381_v37 = vpop.f32.mrf.mxu0 }
  0xe7   : > { %v444_v39 = vpack.c.bf16 %v429_v36, %v428_v35  ;;  %v434_v46 = vmax.f32 %v390_v40, 0.0  ;;  %v382_v55 = vadd.f32 %v821_v29, %v381_v37 }
  0xe8   : > { %v885_v41 = vpop.f32.mrf.mxu0 }
  0xe9   : > { %v393_v43 = vadd.f32 %v885_v41, %v821_v29  ;;  %593 = vmatmul.mubr.bf16.vlgmr.msra.gmra.mxu0 %v444_v39  ;;  %v432_v61 = vmax.f32 %v382_v55, 0.0 }
  0xea   : > { %v384_v44 = vpop.f32.mrf.mxu0  ;;  %602 = vmatprep.mubr.bf16.mxu0 %v1112_v26 }
  0xeb   : > { %v435_v47 = vmax.f32 %v393_v43, 0.0  ;;  %v385_v53 = vadd.f32 %v821_v29, %v384_v44 }
  0xec   : > { %v888_v48 = vpop.f32.mrf.mxu0 }
  0xed   : > { %v447_v50 = vpack.c.bf16 %v435_v47, %v434_v46  ;;  %v433_v58 = vmax.f32 %v385_v53, 0.0  ;;  %v406_v5 = vadd.f32 %v888_v48, %v821_v29 }
  0xee   : > { %v397_v51 = vpop.f32.mrf.mxu0 }
  0xef   : > { %623 = vmatmul.mubr.bf16.vlgmr.msra.gmra.mxu1 %v447_v50  ;;  %v398_v56 = vadd.f32 %v821_v29, %v397_v51  ;;  %v446_v1 = vpack.c.bf16 %v433_v58, %v432_v61  ;;  %v438_v8 = vmax.f32 %v406_v5, 0.0 }
  0xf0   : > { %v889_v54 = vpop.f32.mrf.mxu0  ;;  %632 = vmatprep.mubr.bf16.mxu1 %v1112_v26 }
  0xf1   : > { %603 = vmatmul.mubr.bf16.gmra.mxu0 %v445_v52  ;;  %v436_v62 = vmax.f32 %v398_v56, 0.0  ;;  %v409_v2 = vadd.f32 %v889_v54, %v821_v29 }
  0xf2   : > { %v400_v57 = vpop.f32.mrf.mxu0  ;;  %612 = vmatprep.mubr.bf16.mxu0 %v1112_v26 }
  0xf3   : > { %v401_v59 = vadd.f32 %v821_v29, %v400_v57  ;;  %v439_v6 = vmax.f32 %v409_v2, 0.0 }
  0xf4   : > { %v892_v60 = vpop.f32.mrf.mxu0 }
  0xf5   : > { %v437_v63 = vmax.f32 %v401_v59, 0.0  ;;  %v449_v9 = vpack.c.bf16 %v439_v6, %v438_v8  ;;  %v422_v14 = vadd.f32 %v892_v60, %v821_v29 }
  0xf6   : > { %v413_v0 = vpop.f32.mrf.mxu0 }
  0xf7   : > { %v448_v3 = vpack.c.bf16 %v437_v63, %v436_v62  ;;  %v414_v10 = vadd.f32 %v821_v29, %v413_v0  ;;  %v442_v17 = vmax.f32 %v422_v14, 0.0 }
  0xf8   : > { %v893_v4 = vpop.f32.mrf.mxu0 }
  0xf9   : > { %613 = vmatmul.mubr.bf16.gmra.mxu0 %v446_v1  ;;  %633 = vmatmul.mubr.bf16.gmra.mxu1 %v448_v3  ;;  %v440_v12 = vmax.f32 %v414_v10, 0.0  ;;  %v425_v15 = vadd.f32 %v893_v4, %v821_v29 }
  0xfa   : > { %642 = vmatprep.mubr.bf16.mxu1 %v1112_v26  ;;  %v416_v7 = vpop.f32.mrf.mxu0 }
  0xfb   : > { %v417_v11 = vadd.f32 %v821_v29, %v416_v7  ;;  %v443_v18 = vmax.f32 %v425_v15, 0.0 }
  0xfd   : > { %v441_v13 = vmax.f32 %v417_v11, 0.0  ;;  %v451_v19 = vpack.c.bf16 %v443_v18, %v442_v17 }
  0xff   : > { %v450_v16 = vpack.c.bf16 %v441_v13, %v440_v12 }
 0x101   : > { %643 = vmatmul.mubr.bf16.gmra.mxu1 %v449_v9 }
 0x102   : > { %652 = vmatprep.mubr.bf16.mxu1 %v1112_v26 }
 0x109   : > { %653 = vmatmul.mubr.bf16.gmra.mxu1 %v450_v16 }
 0x10a   : > { %662 = vmatprep.mubr.bf16.mxu1 %v1112_v26 }
 0x111   : > { %663 = vmatmul.mubr.bf16.gmra.mxu1 %v451_v19 }
 0x1a9   : > { %v594_v28 = vpop.f32.mrf.mxu0 }
 0x1aa   : > { %v595_v26 = vadd.f32 %v594_v28, %v1284_v25 }
 0x1ab   : > { %v596_v29 = vpop.f32.mrf.mxu0 }
 0x1ac   : > { %986 = vtanh.f32 %v595_v26  ;;  %v597_v30 = vadd.f32 %v596_v29, %v1286_v27 }
 0x1ad   : > { %v598_v31 = vpop.f32.mrf.mxu0 }
 0x1ae   : > { %988 = vtanh.f32 %v597_v30  ;;  %v599_v32 = vadd.f32 %v598_v31, %v1284_v25 }
 0x1af   : > { %v600_v33 = vpop.f32.mrf.mxu0  ;;  %v624_v34 = vpop.f32.mrf.mxu1 }
 0x1b0   : > { %990 = vtanh.f32 %v599_v32  ;;  %v601_v35 = vadd.f32 %v600_v33, %v1286_v27  ;;  %v625_v36 = vadd.f32 %v624_v34, %v1284_v25 }
 0x1b1   : > { %v604_v37 = vpop.f32.mrf.mxu0  ;;  %v626_v38 = vpop.f32.mrf.mxu1 }
 0x1b2   : > { %992 = vtanh.f32 %v601_v35  ;;  %v605_v39 = vadd.f32 %v604_v37, %v1284_v25  ;;  %v627_v40 = vadd.f32 %v626_v38, %v1286_v27 }
 0x1b3   : > { %994 = vtanh.f32 %v625_v36  ;;  %v606_v41 = vpop.f32.mrf.mxu0  ;;  %v628_v42 = vpop.f32.mrf.mxu1 }
 0x1b4   : > { %996 = vtanh.f32 %v605_v39  ;;  %v607_v43 = vadd.f32 %v606_v41, %v1286_v27  ;;  %v629_v44 = vadd.f32 %v628_v42, %v1284_v25 }
 0x1b5   : > { %998 = vtanh.f32 %v627_v40  ;;  %v608_v45 = vpop.f32.mrf.mxu0  ;;  %v630_v46 = vpop.f32.mrf.mxu1 }
 0x1b6   : > { %1000 = vtanh.f32 %v607_v43  ;;  %v609_v47 = vadd.f32 %v608_v45, %v1284_v25  ;;  %v631_v48 = vadd.f32 %v630_v46, %v1286_v27 }
 0x1b7   : > { %1002 = vtanh.f32 %v629_v44  ;;  %v610_v49 = vpop.f32.mrf.mxu0 }
 0x1b8   : > { %1004 = vtanh.f32 %v609_v47  ;;  %v611_v50 = vadd.f32 %v610_v49, %v1286_v27 }
 0x1b9   : > { %v987_v51 = vpop.eup %986  ;;  %1006 = vtanh.f32 %v631_v48  ;;  %v614_v52 = vpop.f32.mrf.mxu0 }
 0x1ba   : > { %v634_v53 = vpop.f32.mrf.mxu1  ;;  %705 = vst [vmem:[%s1303_s30] sm:$0xff] %v987_v51  ;;  %1008 = vtanh.f32 %v611_v50  ;;  %v615_v54 = vadd.f32 %v614_v52, %v1284_v25 }
 0x1bb   : > { %v635_v55 = vadd.f32 %v634_v53, %v1284_v25  ;;  %v989_v56 = vpop.eup %988  ;;  %v616_v57 = vpop.f32.mrf.mxu0 }
 0x1bc   : > { %v636_v58 = vpop.f32.mrf.mxu1  ;;  %706 = vst [vmem:[%s1303_s30 + $0x8] sm:$0xff] %v989_v56  ;;  %1010 = vtanh.f32 %v615_v54  ;;  %v617_v59 = vadd.f32 %v616_v57, %v1286_v27 }
 0x1bd   : > { %v637_v60 = vadd.f32 %v636_v58, %v1286_v27  ;;  %v991_v61 = vpop.eup %990  ;;  %1012 = vtanh.f32 %v635_v55  ;;  %v618_v62 = vpop.f32.mrf.mxu0 }
 0x1be   : > { %v638_v63 = vpop.f32.mrf.mxu1  ;;  %707 = vst [vmem:[%s1303_s30 + $0x10] sm:$0xff] %v991_v61  ;;  %1014 = vtanh.f32 %v617_v59  ;;  %v619_v0 = vadd.f32 %v618_v62, %v1284_v25 }
 0x1bf   : > { %v639_v1 = vadd.f32 %v638_v63, %v1284_v25  ;;  %v993_v2 = vpop.eup %992  ;;  %1016 = vtanh.f32 %v637_v60  ;;  %v620_v3 = vpop.f32.mrf.mxu0 }
 0x1c0   : > { %v640_v4 = vpop.f32.mrf.mxu1  ;;  %v995_v5 = vpop.eup %994  ;;  %708 = vst [vmem:[%s1303_s30 + $0x18] sm:$0xff] %v993_v2  ;;  %1018 = vtanh.f32 %v619_v0  ;;  %v621_v6 = vadd.f32 %v620_v3, %v1286_v27 }
 0x1c1   : > { %v641_v7 = vadd.f32 %v640_v4, %v1286_v27  ;;  %v997_v8 = vpop.eup %996  ;;  %717 = vst [vmem:[%s1303_s30 + $0x60] sm:$0xff] %v995_v5  ;;  %1020 = vtanh.f32 %v639_v1 }
 0x1c2   : > { %v644_v9 = vpop.f32.mrf.mxu1  ;;  %v999_v10 = vpop.eup %998  ;;  %709 = vst [vmem:[%s1303_s30 + $0x20] sm:$0xff] %v997_v8  ;;  %1022 = vtanh.f32 %v621_v6 }
 0x1c3   : > { %v645_v11 = vadd.f32 %v644_v9, %v1284_v25  ;;  %v1001_v12 = vpop.eup %1000  ;;  %718 = vst [vmem:[%s1303_s30 + $0x68] sm:$0xff] %v999_v10  ;;  %1024 = vtanh.f32 %v641_v7 }
 0x1c4   : > { %v646_v13 = vpop.f32.mrf.mxu1  ;;  %v1003_v14 = vpop.eup %1002  ;;  %710 = vst [vmem:[%s1303_s30 + $0x28] sm:$0xff] %v1001_v12 }
 0x1c5   : > { %1026 = vtanh.f32 %v645_v11  ;;  %v647_v15 = vadd.f32 %v646_v13, %v1286_v27  ;;  %v1005_v16 = vpop.eup %1004  ;;  %719 = vst [vmem:[%s1303_s30 + $0x70] sm:$0xff] %v1003_v14 }
 0x1c6   : > { %v648_v17 = vpop.f32.mrf.mxu1  ;;  %v1007_v18 = vpop.eup %1006  ;;  %711 = vst [vmem:[%s1303_s30 + $0x30] sm:$0xff] %v1005_v16 }
 0x1c7   : > { %1028 = vtanh.f32 %v647_v15  ;;  %v649_v19 = vadd.f32 %v648_v17, %v1284_v25  ;;  %v1009_v20 = vpop.eup %1008  ;;  %720 = vst [vmem:[%s1303_s30 + $0x78] sm:$0xff] %v1007_v18 }
 0x1c8   : > { %v650_v21 = vpop.f32.mrf.mxu1  ;;  %712 = vst [vmem:[%s1303_s30 + $0x38] sm:$0xff] %v1009_v20 }
 0x1c9   : > { %1030 = vtanh.f32 %v649_v19  ;;  %v651_v22 = vadd.f32 %v650_v21, %v1286_v27  ;;  %v1011_v23 = vpop.eup %1010 }
 0x1ca   : > { %v654_v24 = vpop.f32.mrf.mxu1  ;;  %v1013_v28 = vpop.eup %1012  ;;  %713 = vst [vmem:[%s1303_s30 + $0x40] sm:$0xff] %v1011_v23 }
 0x1cb   : > { %1032 = vtanh.f32 %v651_v22  ;;  %v655_v26 = vadd.f32 %v654_v24, %v1284_v25  ;;  %v1015_v29 = vpop.eup %1014  ;;  %721 = vst [vmem:[%s1303_s30 + $0x80] sm:$0xff] %v1013_v28 }
 0x1cc   : > { %v656_v30 = vpop.f32.mrf.mxu1  ;;  %v1017_v31 = vpop.eup %1016  ;;  %714 = vst [vmem:[%s1303_s30 + $0x48] sm:$0xff] %v1015_v29 }
 0x1cd   : > { %1034 = vtanh.f32 %v655_v26  ;;  %v657_v32 = vadd.f32 %v656_v30, %v1286_v27  ;;  %v1019_v33 = vpop.eup %1018  ;;  %722 = vst [vmem:[%s1303_s30 + $0x88] sm:$0xff] %v1017_v31 }
 0x1ce   : > { %v658_v34 = vpop.f32.mrf.mxu1  ;;  %v1021_v35 = vpop.eup %1020  ;;  %715 = vst [vmem:[%s1303_s30 + $0x50] sm:$0xff] %v1019_v33 }
 0x1cf   : > { %1036 = vtanh.f32 %v657_v32  ;;  %v659_v36 = vadd.f32 %v658_v34, %v1284_v25  ;;  %v1023_v37 = vpop.eup %1022  ;;  %723 = vst [vmem:[%s1303_s30 + $0x90] sm:$0xff] %v1021_v35 }
 0x1d0   : > { %v660_v38 = vpop.f32.mrf.mxu1  ;;  %v1025_v39 = vpop.eup %1024  ;;  %716 = vst [vmem:[%s1303_s30 + $0x58] sm:$0xff] %v1023_v37 }
 0x1d1   : > { %1038 = vtanh.f32 %v659_v36  ;;  %v661_v40 = vadd.f32 %v660_v38, %v1286_v27  ;;  %724 = vst [vmem:[%s1303_s30 + $0x98] sm:$0xff] %v1025_v39 }
 0x1d2   : > { %v1027_v41 = vpop.eup %1026  ;;  %v664_v42 = vpop.f32.mrf.mxu1 }
 0x1d3   : > { %725 = vst [vmem:[%s1303_s30 + $0xa0] sm:$0xff] %v1027_v41  ;;  %1040 = vtanh.f32 %v661_v40  ;;  %v665_v43 = vadd.f32 %v664_v42, %v1284_v25 }
 0x1d4   : > { %v1029_v44 = vpop.eup %1028  ;;  %v666_v45 = vpop.f32.mrf.mxu1 }
 0x1d5   : > { %726 = vst [vmem:[%s1303_s30 + $0xa8] sm:$0xff] %v1029_v44  ;;  %1042 = vtanh.f32 %v665_v43  ;;  %v667_v46 = vadd.f32 %v666_v45, %v1286_v27 }
 0x1d6   : > { %v1031_v47 = vpop.eup %1030  ;;  %v668_v48 = vpop.f32.mrf.mxu1 }
 0x1d7   : > { %727 = vst [vmem:[%s1303_s30 + $0xb0] sm:$0xff] %v1031_v47  ;;  %1044 = vtanh.f32 %v667_v46  ;;  %v669_v49 = vadd.f32 %v668_v48, %v1284_v25 }
 0x1d8   : > { %v1033_v50 = vpop.eup %1032  ;;  %v670_v51 = vpop.f32.mrf.mxu1 }
 0x1d9   : > { %728 = vst [vmem:[%s1303_s30 + $0xb8] sm:$0xff] %v1033_v50  ;;  %1046 = vtanh.f32 %v669_v49  ;;  %v671_v52 = vadd.f32 %v670_v51, %v1286_v27 }
 0x1da   : > { %v1035_v53 = vpop.eup %1034 }
 0x1db   : > { %729 = vst [vmem:[%s1303_s30 + $0xc0] sm:$0xff] %v1035_v53  ;;  %1048 = vtanh.f32 %v671_v52 }
 0x1dc   : > { %v1037_v54 = vpop.eup %1036 }
 0x1dd   : > { %730 = vst [vmem:[%s1303_s30 + $0xc8] sm:$0xff] %v1037_v54 }
 0x1de   : > { %v1039_v55 = vpop.eup %1038 }
 0x1df   : > { %731 = vst [vmem:[%s1303_s30 + $0xd0] sm:$0xff] %v1039_v55 }
 0x1e0   : > { %v1041_v25 = vpop.eup %1040 }
 0x1e1   : > { %732 = vst [vmem:[%s1303_s30 + $0xd8] sm:$0xff] %v1041_v25 }
 0x1e2   : > { %v1043_v56 = vpop.eup %1042 }
 0x1e3   : > { %733 = vst [vmem:[%s1303_s30 + $0xe0] sm:$0xff] %v1043_v56 }
 0x1e4   : > { %v1045_v57 = vpop.eup %1044 }
 0x1e5   : > { %734 = vst [vmem:[%s1303_s30 + $0xe8] sm:$0xff] %v1045_v57 }
 0x1e6   : > { %v1047_v27 = vpop.eup %1046 }
 0x1e7   : > { %735 = vst [vmem:[%s1303_s30 + $0xf0] sm:$0xff] %v1047_v27 }
 0x1e8   : > { %v1049_v58 = vpop.eup %1048 }
 0x1e9   : > { %736 = vst [vmem:[%s1303_s30 + $0xf8] sm:$0xff] %v1049_v58 }
 0x1ea   : > { %1063 = shalt.err (!%p1060_p3)
}
 0x1eb   : > { %s1064_s14 = scalar_lea.hbm %s1360_s25, 4096  ;;  %s1068_s17 = scalar_lea.hbm %s1413_s5, 8192 }
 0x1ec   : > { %p1065_p4 = scmp.ne.s32.totalorder %s1360_s25, %s1064_s14  ;;  %p1069_p9 = scmp.lt.s32.totalorder %s1360_s25, %s1413_s5 }
 0x1ed   : > { %p1070_p10 = scmp.lt.s32.totalorder %s1068_s17, %s1064_s14 }
 0x1ee   : > { %p1066_p7 = pnand %p1065_p4, %p1184_p5 }
 0x1ef   : > { %p1071_p11 = por %p1070_p10, %p1069_p9 }
 0x1f0   : > { %p1067_p8 = pneg %p1066_p7 }
 0x1f2   : > { %p1072_p12 = pnand %p1071_p11, %p1067_p8 }
 0x1f4   : > { %1075 = shalt.err (!%p1072_p12)
}
 0x1f5   : > { %s1114_s30 = smov 256   ;;  %s1115_s6 = smov 16  }
 0x1f6   : > { %910 = dma.vmem_to_hbm [thread:$0]  (%p1184_p5), %s1362_s7, 4096, %s1360_s25, %s1368_s10, %s1114_s30, %s1114_s30, %s1115_s6  }
 0x1f7 PF: > { %p916_p13 = scmp.ge.s32.totalorder %s1110_s21, 2  ;;  %s767_s8 = sand.u32 1, %s1098_s18  }
 0x1f8   : > { %s768_s9 = scalar_lea.sflag [#allocation3], %s767_s8 }
 0x1f9   : > { %p913_p0 = pnand %p916_p13, %p1188_p6 }
 0x1fb   : > { %p914_p1 = pneg %p913_p0 }
 0x1fd   : > { %1093 = dma.done.wait (%p914_p1), %s768_s9, 4096  }
 0x1fe   : > { %1095 = vsyncadd (%p914_p1), %s768_s9, 4294963200  ;;  %p15_p2 = scmp.ge.s32.totalorder %s1171_s24, 4   ;;  %s1416_s18 = smov %s1102_s19 }
 0x1ff   : > { %s1417_s19 = smov %s1106_s20  ;;  %s1418_s20 = smov %s1182_s27 }
 0x200   : > { %s1419_s21 = smov %s1171_s24  ;;  %17 = sbr.rel (!%p15_p2) target bundleno = 3 (0x3), region = 75 }
 0x205   :  { %773 = vsyncpa [#allocation3], 1 }
 0x206   :  { %775 = vsyncpa [#allocation3 + $0x1], 1 }

</bundles_post_ra>
